<compile_context>
chip_gen: v7x
topology: tpu7x:2x2x1
jax: 0.10.0
libtpu: 0.0.40
codegen_flags: <defaults>
</compile_context>

<pallas_src>
import jax
import jax.numpy as jnp
from jax.experimental import pallas as pl
from jax.experimental.pallas import tpu as pltpu


def _adapter_kernel(x_ref, w_ref, rm_ref, o_ref):
    # x_ref:  (TM, D)  hidden-state rows (native dtype)
    # w_ref:  (D, 1)   role_gate weight column, delta pre-folded, x's dtype
    # rm_ref: (TM, 1)  role-mask column (f32), pre-gated by (delta != 0)
    # o_ref:  (TM, D)  output rows
    x = x_ref[...]

    # logits = delta * (x @ gate_w.T) on the MXU, f32 accumulation.
    # Row-local: output row m depends only on input row m, so the ragged
    # final grid block (padded reads, masked writes) is safe.
    logits = jnp.dot(x, w_ref[...], preferred_element_type=jnp.float32)  # (TM,1)
    role_influence = jax.nn.sigmoid(logits)                              # EUP
    role_weight = rm_ref[...] * role_influence                           # (TM,1)
    adaptation = jnp.tanh(role_weight) * jnp.float32(0.1)                # (TM,1)

    # Scalar chain stays f32; the final scale/store happens in x's dtype so
    # no (TM, D) f32 temporary is created (one extra bf16 rounding of the
    # scale vs. an f32-upcast reference — the PyTorch module runs the whole
    # chain in fp16 anyway).
    scale = (1.0 + adaptation).astype(x.dtype)
    o_ref[...] = (x * scale).astype(o_ref.dtype)


def _round_up(x, m):
    return ((x + m - 1) // m) * m


def _cdiv(a, b):
    return -(-a // b)


def _vmem_limits():
    """(vmem_limit_bytes, budget_fraction) sized per chip generation."""
    try:
        cap = pltpu.get_tpu_info().vmem_capacity_bytes  # physical per-core
    except Exception:
        cap = 64 * 1024 * 1024  # conservative fallback (v7x-sized)
    if cap <= 64 * 1024 * 1024:
        # v7x-class: 64 MiB physical -> 48 MiB scoped limit, aggressive use.
        limit = min(cap, 48 * 1024 * 1024)
        frac = 0.8
    else:
        # v5e/v6e: 128 MiB physical -> unlock up to 96 MiB.
        limit = min(cap, 96 * 1024 * 1024)
        frac = 0.6
    return int(limit), frac


def _choose_tile_rows(rows, d_model, itemsize, budget_bytes, max_tile_rows):
    """Largest row tile that fits the VMEM budget, with an even (>=8 when
    possible) grid-step count so megacore chips split the work evenly and the
    DMA pipeline stays filled."""
    rows8 = _round_up(rows, 8)
    # Per-row VMEM: double-buffered input + output full-D blocks, one extra
    # full-D row of headroom for the fused product/broadcast, plus the
    # double-buffered (TM, 1) f32 mask column (lane dim pads to 128 in VMEM).
    per_row = 2 * (2 * d_model * itemsize) + d_model * itemsize + 2 * 128 * 4
    t = max(8, budget_bytes // per_row)
    t = min(t, max_tile_rows, rows8)
    t = max(8, (t // 8) * 8)

    def steps(tt):
        return _cdiv(rows8, tt)

    # Target >= 8 grid steps when the problem is big enough (pipelining +
    # megacore), then force an even step count (v7x: 2 TCs share the
    # "parallel" axis; an odd count leaves one TC a lone tail tile).
    if steps(t) < 8 and rows8 // 8 >= 8:
        t = max(8, (rows8 // 8 // 8) * 8)
    while t > 8 and steps(t) % 2 != 0:
        t -= 8
    return t


def role_aware_adapter(hidden_states, role_mask, role_gate_weight, delta,
                       *, max_tile_rows=2048, donate_hidden=False):
    """
    hidden_states:    (B, L, D)
    role_mask:        (B, L) int/float/bool mask (or None)
    role_gate_weight: (1, D) (PyTorch nn.Linear(d_model, 1).weight layout)
    delta:            python float / 0-d or (1,) scalar (may be traced)
    donate_hidden:    alias the output onto the hidden_states buffer (only
                      set True if the caller no longer needs hidden_states).
    """
    B, L, D = hidden_states.shape
    if role_mask is None:
        return hidden_states

    # Host-side short-circuit for a concrete delta == 0 (matches
    # `if self.delta.item() == 0`).  When delta is traced (under jit) the
    # same semantics are preserved by gating the tiny mask below — no extra
    # full-tensor HBM pass.
    try:
        if float(delta) == 0.0:
            return hidden_states
    except (TypeError, jax.errors.ConcretizationTypeError):
        pass

    rows = B * L
    itemsize = jnp.dtype(hidden_states.dtype).itemsize
    vmem_limit, budget_frac = _vmem_limits()
    # Constant VMEM for the double-buffered (D, 1) weight column (lanes pad
    # to 128 in VMEM).
    weight_vmem = 2 * D * 128 * itemsize
    budget = int(vmem_limit * budget_frac) - weight_vmem
    tile_rows = _choose_tile_rows(rows, D, itemsize, budget, max_tile_rows)

    x2d = hidden_states.reshape(rows, D)

    delta_f32 = jnp.asarray(delta, jnp.float32).reshape(())
    # Fold the delta==0 short-circuit into the mask (rows*4 bytes of work).
    gate = (delta_f32 != 0.0).astype(jnp.float32)
    rm2d = role_mask.reshape(rows, 1).astype(jnp.float32) * gate
    # NOTE: (TM,1) mask blocks pad to 128 lanes in VMEM; for real Llama D
    # this is noise and it is accounted for in the tile budget.  A lane-dense
    # mask layout would need an in-kernel transpose and is not worth it here.

    # Fold delta into the gate weight (sigmoid(delta*(x@w.T)) ==
    # sigmoid(x@(delta*w).T)) and pre-transpose to a (D, 1) column in x's
    # dtype so the logits use the idle MXU with f32 accumulation.
    w_col = delta_f32 * role_gate_weight.reshape(1, D).astype(jnp.float32)
    w_col = w_col.reshape(D, 1).astype(hidden_states.dtype)

    grid = (_cdiv(rows, tile_rows),)

    cost = pl.CostEstimate(
        flops=3 * rows * D,                 # dot + final scale
        transcendentals=2 * rows,           # sigmoid + tanh per row
        bytes_accessed=2 * rows * D * itemsize + rows * 4 + D * itemsize,
    )

    # If D is not a multiple of 128 (toy configs) stores fall back to masked
    # lane accesses; real Llama hidden sizes are 128-multiples so the output
    # slab is lane-dense.
    out2d = pl.pallas_call(
        _adapter_kernel,
        out_shape=jax.ShapeDtypeStruct((rows, D), hidden_states.dtype),
        grid_spec=pltpu.PrefetchScalarGridSpec(
            num_scalar_prefetch=0,
            grid=grid,
            in_specs=[
                pl.BlockSpec((tile_rows, D), lambda i: (i, 0)),  # hidden rows
                pl.BlockSpec((D, 1), lambda i: (0, 0)),          # gate weight column
                pl.BlockSpec((tile_rows, 1), lambda i: (i, 0)),  # role-mask column
            ],
            out_specs=pl.BlockSpec((tile_rows, D), lambda i: (i, 0)),
        ),
        compiler_params=pltpu.CompilerParams(
            dimension_semantics=("parallel",),
            vmem_limit_bytes=vmem_limit,
        ),
        cost_estimate=cost,
        input_output_aliases=({0: 0} if donate_hidden else {}),
    )(x2d, w_col, rm2d)

    return out2d.reshape(B, L, D)


def _reference(hidden_states, role_mask, role_gate_weight, delta):
    logits = hidden_states @ role_gate_weight.T               # (B, L, 1)
    role_influence = jax.nn.sigmoid(delta * logits)[..., 0]   # (B, L)
    role_weight = role_mask.astype(jnp.float32) * role_influence
    adaptation = jnp.tanh(role_weight)[..., None] * 0.1
    return hidden_states * (1.0 + adaptation)


if __name__ == "__main__":
    # Small shapes consistent with the module: d_model=128, nhead=4
    # (head_dim=32 — only used by the unused orthogonal buffer U),
    # batch=2, seq=8.  d_model is a 128-multiple so the output is lane-dense.
    B, L, D = 2, 8, 128
    bias_delta = 1.0

    key = jax.random.PRNGKey(0)
    k_x, k_w, k_m = jax.random.split(key, 3)

    hidden_states = jax.random.normal(k_x, (B, L, D), dtype=jnp.float32)
    role_mask = (jax.random.uniform(k_m, (B, L)) > 0.5).astype(jnp.int32)
    # The module zero-initializes role_gate.weight; use small non-zero values
    # so the gating path is actually exercised.
    role_gate_weight = 0.02 * jax.random.normal(k_w, (1, D), dtype=jnp.float32)

    out = role_aware_adapter(hidden_states, role_mask, role_gate_weight,
                             bias_delta)
    out = jax.block_until_ready(out)

    ref = _reference(hidden_states, role_mask, role_gate_weight, bias_delta)
    assert out.shape == (B, L, D)
    assert jnp.allclose(out, ref, atol=1e-5, rtol=1e-5), "mismatch vs reference"

    # Traced delta == 0 under jit must reproduce the PyTorch short-circuit
    # (out == hidden) with no extra full-tensor pass (gate folded into mask).
    out_zero = jax.jit(role_aware_adapter)(
        hidden_states, role_mask, role_gate_weight, jnp.zeros((1,), jnp.float32))
    out_zero = jax.block_until_ready(out_zero)
    assert jnp.allclose(out_zero, hidden_states), "delta==0 short-circuit broken"

    print("KERNEL_OK")
</pallas_src>

<mosaic_0001>
module attributes {stable_mosaic.version = 11 : i64} {
  func.func @_adapter_kernel(%arg0: i32, %arg1: memref<8x128xf32, #tpu.memory_space<vmem>>, %arg2: memref<128x1xf32, #tpu.memory_space<vmem>>, %arg3: memref<8x1xf32, #tpu.memory_space<vmem>>, %arg4: memref<8x128xf32, #tpu.memory_space<vmem>>) attributes {dimension_semantics = [#tpu.dimension_semantics<parallel>], iteration_bounds = array<i64: 2>, scalar_prefetch = 0 : i64, scratch_operands = 0 : i64, tpu.core_type = #tpu.core_type<tc>, window_params = [{transform_indices = @transform_0, window_bounds = array<i64: 8, 128>}, {pipeline_mode = #tpu.pipeline_mode<synchronous>, transform_indices = @transform_1, window_bounds = array<i64: 128, 1>}, {transform_indices = @transform_2, window_bounds = array<i64: 8, 1>}, {transform_indices = @transform_3, window_bounds = array<i64: 8, 128>}]} {
    %c0 = arith.constant 0 : index
    %c0_0 = arith.constant 0 : index
    %0 = vector.load %arg1[%c0, %c0_0] : memref<8x128xf32, #tpu.memory_space<vmem>>, vector<8x128xf32>
    %c0_1 = arith.constant 0 : index
    %c0_2 = arith.constant 0 : index
    %1 = vector.load %arg2[%c0_1, %c0_2] : memref<128x1xf32, #tpu.memory_space<vmem>>, vector<128x1xf32>
    %cst = arith.constant dense<0.000000e+00> : vector<8x1xf32>
    %2 = tpu.matmul %0, %1, %cst {dimension_numbers = #tpu.dot_dimension_numbers<[1], [0], [0], [1], [0, 0, 1, 1], [], []>} : vector<8x128xf32>, vector<128x1xf32>, vector<8x1xf32> -> vector<8x1xf32>
    %3 = arith.negf %2 : vector<8x1xf32>
    %4 = math.exp %3 : vector<8x1xf32>
    %cst_3 = arith.constant 1.000000e+00 : f32
    %5 = vector.broadcast %cst_3 : f32 to vector<8x1xf32>
    %6 = arith.addf %5, %4 : vector<8x1xf32>
    %7 = arith.divf %5, %6 : vector<8x1xf32>
    %c0_4 = arith.constant 0 : index
    %c0_5 = arith.constant 0 : index
    %8 = vector.load %arg3[%c0_4, %c0_5] : memref<8x1xf32, #tpu.memory_space<vmem>>, vector<8x1xf32>
    %9 = arith.mulf %8, %7 : vector<8x1xf32>
    %10 = math.tanh %9 : vector<8x1xf32>
    %cst_6 = arith.constant 1.000000e-01 : f32
    %11 = vector.broadcast %cst_6 : f32 to vector<8x1xf32>
    %12 = arith.mulf %10, %11 : vector<8x1xf32>
    %cst_7 = arith.constant 1.000000e+00 : f32
    %13 = vector.broadcast %cst_7 : f32 to vector<8x1xf32>
    %14 = arith.addf %13, %12 : vector<8x1xf32>
    %15 = vector.broadcast %14 : vector<8x1xf32> to vector<8x128xf32>
    %16 = arith.mulf %0, %15 : vector<8x128xf32>
    %c0_8 = arith.constant 0 : index
    %c0_9 = arith.constant 0 : index
    %17 = vector.load %arg4[%c0_8, %c0_9] : memref<8x128xf32, #tpu.memory_space<vmem>>, vector<8x128xf32>
    tpu.vector_store %arg4[%c0_8, %c0_9], %16 {strides = array<i32>} : memref<8x128xf32, #tpu.memory_space<vmem>>, vector<8x128xf32>,
    return
  }
  func.func @transform_0(%arg0: i32) -> (i32, i32) {
    %c0_i32 = arith.constant 0 : i32
    %c0_i32_0 = arith.constant 0 : i32
    return %arg0, %c0_i32 : i32, i32
  }
  func.func @transform_1(%arg0: i32) -> (i32, i32) {
    %c0_i32 = arith.constant 0 : i32
    %c0_i32_0 = arith.constant 0 : i32
    %c0_i32_1 = arith.constant 0 : i32
    return %c0_i32, %c0_i32_0 : i32, i32
  }
  func.func @transform_2(%arg0: i32) -> (i32, i32) {
    %c0_i32 = arith.constant 0 : i32
    %c0_i32_0 = arith.constant 0 : i32
    return %arg0, %c0_i32 : i32, i32
  }
  func.func @transform_3(%arg0: i32) -> (i32, i32) {
    %c0_i32 = arith.constant 0 : i32
    %c0_i32_0 = arith.constant 0 : i32
    return %arg0, %c0_i32 : i32, i32
  }
}

</mosaic_0001>

<bundles_post_ra>
// kernel: tpu_custom_call.1
= control target key start
LH: loop header
LB: loop body
LE: loop exit
PB: predicated region body
PF: predicated region fallthrough
CT: control target
= control target key end

     0   :  { %8 = vsyncpa [#allocation3], 0  ;;  %s751_s0 = inlined_call_operand.vmem [shape: f32[16,128], index: 0, kind: input, shape index: {}]   ;;  %s752_s1 = inlined_call_operand.vmem [shape: f32[128,1], index: 1, kind: input, shape index: {}]   ;;  %s753_s2 = inlined_call_operand.vmem [shape: f32[16,1], index: 2, kind: input, shape index: {}]   ;;  %s754_s3 = inlined_call_operand.hbm [shape: f32[16,128], index: 3, kind: output, shape index: {}]  }
   0x1   :  { %10 = vsyncpa [#allocation3 + $0x1], 0  ;;  %s600_s12 = smov 0   ;;  %s602_s13 = smov 0  }
   0x2   :  { %s604_s14 = smov 0   ;;  %s606_s15 = smov 0  }
   0x3 LB: > { %s621_s16 = sadd.s32 4294967295, %s573_s15   ;;  %s373_s17 = sadd.s32 4294967294, %s573_s15   ;;  %s573_s15 = sphi %s606_s15, %s760_s15   ;;  %s569_s14 = sphi %s604_s14, %s759_s14   ;;  %s565_s13 = sphi %s602_s13, %s758_s13   ;;  %s561_s12 = sphi %s600_s12, %s757_s12  }
   0x4   : > { %s625_s18 = sadd.s32 1, %s573_s15   ;;  %s96_s19 = sadd.s32 1, %s569_s14 }
   0x5   : > { %s93_s20 = ssub.s32 %s573_s15, %s625_s18  ;;  %p106_p0 = scmp.ne.s32.totalorder %s569_s14, %s565_s13 }
   0x6   : > { %p94_p1 = scmp.eq.s32.totalorder %s93_s20, 0  ;;  %p107_p2 = scmp.eq.s32.totalorder %s621_s16, 1 }
   0x7   : > { %p112_p3 = scmp.ne.s32.totalorder %s565_s13, %s561_s12  ;;  %p113_p4 = scmp.eq.s32.totalorder %s373_s17, 1 }
   0x8   : > { %s636_s21 = scalar_select %p94_p1, %s569_s14, %s96_s19  }
   0x9   : > { %p638_p5 = por %p107_p2, %p106_p0  ;;  %p642_p6 = por %p113_p4, %p112_p3 }
   0xa   : > { %p376_p7 = scmp.ge.s32.totalorder %s573_s15, 1  ;;  %p148_p8 = scmp.lt.s32.totalorder %s573_s15, 3 }
   0xc   : > { %p149_p9 = pnand %p376_p7, %p148_p8 }
   0xd   : > { %v184_v0 = vld [vmem:[%s752_s1] sm:$0xff] (!%p149_p9)  ;;  %v185_v1 = vld [vmem:[%s752_s1 + $0x8] sm:$0xff] (!%p149_p9)  ;;  %v186_v2 = vld [vmem:[%s752_s1 + $0x10] sm:$0xff] (!%p149_p9)  ;;  %v575_v3 = vmov (!%p149_p9), 0.0|0.0   ;;  %vm576_vm0 = vmmov (!%p149_p9), 0   ;;  %v577_v6 = vmov (!%p149_p9), 0.0  }
   0xe   : > { %152 = sbr.rel (%p149_p9) target bundleno = 446 (0x1be), region = 32  ;;  %437 = vmatprep.subr.bf16.mxu0 (!%p149_p9), %v575_v3  ;;  %v438_v4 = vpack.c.bf16 (!%p149_p9), %v185_v1, %v184_v0  ;;  %v187_v5 = vld [vmem:[%s752_s1 + $0x18] sm:$0xff] (!%p149_p9)  ;;  %434 = vmatprep.mubr.msk.f32.mxu0 (!%p149_p9), %vm576_vm0, %v577_v6  ;;  %v188_v8 = vld [vmem:[%s752_s1 + $0x20] sm:$0xff] (!%p149_p9)  ;;  %v189_v9 = vld [vmem:[%s752_s1 + $0x28] sm:$0xff] (!%p149_p9)  ;;  %p175_p10 = scmp.lt.s32.totalorder (!%p149_p9), %s621_s16, 1  ;;  %v578_v27 = vmov (!%p149_p9), 0  }
   0xf   : > { %v441_v7 = vpack.c.bf16 (!%p149_p9), %v187_v5, %v186_v2  ;;  %v444_v10 = vpack.c.bf16 (!%p149_p9), %v189_v9, %v188_v8  ;;  %v190_v11 = vld [vmem:[%s752_s1 + $0x30] sm:$0xff] (!%p149_p9)  ;;  %v191_v12 = vld [vmem:[%s752_s1 + $0x38] sm:$0xff] (!%p149_p9)  ;;  %v192_v14 = vld [vmem:[%s752_s1 + $0x40] sm:$0xff] (!%p149_p9)  ;;  %504 = vset.pattern.permute.xlu0 (!%p149_p9), %v578_v27  ;;  %s172_s28 = sand.u32 (!%p149_p9), 1, %s565_s13   ;;  %s382_s30 = sshll.u32 (!%p149_p9), %s621_s16, 7 }
  0x10   : > { %439 = vmatpush3.bf16.msra.mxu0 (!%p149_p9), %v438_v4  ;;  %v447_v13 = vpack.c.bf16 (!%p149_p9), %v191_v12, %v190_v11  ;;  %v193_v15 = vld [vmem:[%s752_s1 + $0x48] sm:$0xff] (!%p149_p9)  ;;  %v194_v17 = vld [vmem:[%s752_s1 + $0x50] sm:$0xff] (!%p149_p9)  ;;  %v195_v18 = vld [vmem:[%s752_s1 + $0x58] sm:$0xff] (!%p149_p9)  ;;  %s377_s29 = sshll.u32 (!%p149_p9), %s172_s28, 3  ;;  %s709_s8 = scalar_lea.hbm (!%p149_p9), %s754_s3, %s382_s30 }
  0x11   : > { %440 = vmatprep.subr.bf16.mxu0 (!%p149_p9), %v575_v3  ;;  %v450_v16 = vpack.c.bf16 (!%p149_p9), %v193_v15, %v192_v14  ;;  %v453_v19 = vpack.c.bf16 (!%p149_p9), %v195_v18, %v194_v17  ;;  %v196_v20 = vld [vmem:[%s752_s1 + $0x60] sm:$0xff] (!%p149_p9)  ;;  %v197_v21 = vld [vmem:[%s752_s1 + $0x68] sm:$0xff] (!%p149_p9)  ;;  %v198_v23 = vld [vmem:[%s752_s1 + $0x70] sm:$0xff] (!%p149_p9)  ;;  %s174_s4 = scalar_lea.vmem (!%p149_p9), [#allocation2], %s377_s29  ;;  %s289_s9 = scalar_lea.sflag (!%p149_p9), [#allocation3], %s172_s28 }
  0x12   : > { %v456_v22 = vpack.c.bf16 (!%p149_p9), %v197_v21, %v196_v20  ;;  %v199_v24 = vld [vmem:[%s752_s1 + $0x78] sm:$0xff] (!%p149_p9)  ;;  %s302_s5 = sshll.u32 (!%p149_p9), %s174_s4, 4  ;;  %s711_s5 = int_to_ptr.vmem [resolvable:$true] %s302_s5 }
  0x13   : > { %v459_v25 = vpack.c.bf16 (!%p149_p9), %v199_v24, %v198_v23  ;;  %s511_s10 = scalar_lea.vmem (!%p149_p9), %s711_s5, 128 }
  0x14   : > { %442 = vmatpush3.bf16.msra.mxu0 (!%p149_p9), %v441_v7  ;;  %p512_p11 = scmp.ne.s32.totalorder (!%p149_p9), %s711_s5, %s511_s10 }
  0x15   : > { %443 = vmatprep.subr.bf16.mxu0 %v575_v3  ;;  %s176_s7 = scalar_select %p175_p10, %s621_s16, 1 }
  0x16   : > { %p513_p12 = pnand %p512_p11, %p638_p5  ;;  %s579_s16 = smov [#allocation2]  }
  0x17   : > { %s378_s17 = sshll.u32 %s176_s7, 3  ;;  %s515_s11 = sshll.u32 %s579_s16, 4  ;;  %s516_s11 = int_to_ptr.vmem [resolvable:$false] %s515_s11 }
  0x18   : > { %445 = vmatpush3.bf16.msra.mxu0 %v444_v10  ;;  %s178_s24 = scalar_lea.vmem %s751_s0, %s378_s17  ;;  %s182_s27 = scalar_lea.vmem %s753_s2, %s378_s17 }
  0x19   : > { %446 = vmatprep.subr.bf16.mxu0 %v575_v3  ;;  %v183_v26 = vld [vmem:[%s178_s24] sm:$0xff]  ;;  %p514_p13 = pneg %p513_p12  ;;  %s517_s17 = scalar_lea.vmem %s516_s11, 256 }
  0x1a   : > { %v276_v33 = vld [vmem:[%s182_s27] sm:$0xff]  ;;  %p518_p0 = scmp.lt.s32.totalorder %s711_s5, %s516_s11  ;;  %p519_p1 = scmp.lt.s32.totalorder %s517_s17, %s511_s10 }
  0x1c   : > { %448 = vmatpush3.bf16.msra.mxu0 %v447_v13  ;;  %p520_p2 = por %p519_p1, %p518_p0 }
  0x1d   : > { %449 = vmatprep.subr.bf16.mxu0 %v575_v3 }
  0x1e   : > { %p521_p3 = pnand %p520_p2, %p514_p13 }
  0x20   : > { %451 = vmatpush3.bf16.msra.mxu0 %v450_v16 }
  0x21   : > { %452 = vmatprep.subr.bf16.mxu0 %v575_v3 }
  0x24   : > { %454 = vmatpush3.bf16.msra.mxu0 %v453_v19 }
  0x25   : > { %455 = vmatprep.subr.bf16.mxu0 %v575_v3 }
  0x28   : > { %457 = vmatpush3.bf16.msra.mxu0 %v456_v22 }
  0x29   : > { %458 = vmatprep.subr.bf16.mxu0 %v575_v3 }
  0x2c   : > { %460 = vmatpush3.bf16.msra.mxu0 %v459_v25 }
  0x2f   : > { %435 = vmatmul.mubr.f32.vlgmr.msra.gmra.mrb[0].mxu0 %v183_v26 }
 0x102   : > { %v266_v28 = vpop.f32.mrb[0].mxu0 }
 0x103   : > { %v380_v29 = vmul.f32 -1.442695, %v266_v28  ;;  %v436_v30 = vpop.f32.mrb[1].mxu0 }
 0x105   : > { %505 = vpow2.f32 %v380_v29 }
 0x10f   : > { %v506_v31 = vpop.eup %505 }
 0x110   : > { %v273_v32 = vadd.f32 1.0, %v506_v31 }
 0x112   : > { %507 = vrcp.f32 %v273_v32 }
 0x11c   : > { %v508_v34 = vpop.eup %507 }
 0x11d   : > { %v277_v35 = vmul.f32 %v508_v34, %v276_v33 }
 0x11f   : > { %509 = vtanh.f32 %v277_v35 }
 0x129   : > { %v510_v36 = vpop.eup %509 }
 0x12a   : > { %v279_v37 = vmul.f32 0.1, %v510_v36 }
 0x12c   : > { %v280_v38 = vadd.f32 1.0, %v279_v37 }
 0x12e   : > { %283 = vperm.xlu0 %504, %v280_v38  }
 0x1ad   : > { %v284_v39 = vpop.permute.xlu0 %283 }
 0x1ae   : > { %v286_v40 = vmul.f32 %v284_v39, %v183_v26 }
 0x1b0   : > { %287 = vst [vmem:[%s174_s4] sm:$0xff] %v286_v40 }
 0x1b1   : > { %524 = shalt.err (!%p521_p3)
}
 0x1b2   : > { %s525_s19 = scalar_lea.hbm %s709_s8, 128  ;;  %s529_s25 = scalar_lea.hbm %s754_s3, 256 }
 0x1b3   : > { %p526_p4 = scmp.ne.s32.totalorder %s709_s8, %s525_s19  ;;  %p530_p9 = scmp.lt.u32.totalorder %s709_s8, %s754_s3 }
 0x1b4   : > { %p531_p10 = scmp.lt.u32.totalorder %s529_s25, %s525_s19  ;;  %p533_p12 = scmp.lt.u32.totalorder %s525_s19, %s709_s8 }
 0x1b5   : > { %p527_p7 = pnand %p526_p4, %p638_p5 }
 0x1b6   : > { %p532_p11 = por %p531_p10, %p530_p9 }
 0x1b7   : > { %p528_p8 = pneg %p527_p7 }
 0x1b8   : > { %p534_p13 = por %p533_p12, %p532_p11 }
 0x1ba   : > { %p535_p0 = pnand %p534_p13, %p528_p8 }
 0x1bc   : > { %538 = shalt.err (!%p535_p0)
}
 0x1bd   : > { %461 = dma.vmem_to_hbm [thread:$0]  (%p638_p5), %s711_s5, 128, %s709_s8, %s289_s9  }
 0x1be PF: > { %p467_p1 = scmp.ge.s32.totalorder %s573_s15, 2  ;;  %s314_s28 = sand.u32 1, %s561_s12  }
 0x1bf   : > { %s315_s29 = scalar_lea.sflag [#allocation3], %s314_s28 }
 0x1c0   : > { %p464_p2 = pnand %p467_p1, %p642_p6 }
 0x1c2   : > { %556 = dma.done.wait (!%p464_p2), %s315_s29, 128  }
 0x1c3   : > { %558 = vsyncadd (!%p464_p2), %s315_s29, 4294967168  ;;  %p13_p3 = scmp.ge.s32.totalorder %s625_s18, 4   ;;  %s757_s12 = smov %s565_s13 }
 0x1c4   : > { %s758_s13 = smov %s569_s14  ;;  %s759_s14 = smov %s636_s21 }
 0x1c5   : > { %s760_s15 = smov %s625_s18  ;;  %15 = sbr.rel (!%p13_p3) target bundleno = 3 (0x3), region = 70 }
 0x1cc   :  { %320 = vsyncpa [#allocation3], 1 }
 0x1cd   :  { %322 = vsyncpa [#allocation3 + $0x1], 1 }

</bundles_post_ra>
